<compile_context>
chip_gen: v7x
topology: tpu7x:2x2x1
jax: 0.10.0
libtpu: 0.0.40
codegen_flags: <defaults>
</compile_context>

<pallas_src>
import math
import jax
import jax.numpy as jnp
from jax.experimental import pallas as pl
from jax.experimental.pallas import tpu as pltpu

QMAX_W = 127.0  # 8-bit symmetric weight quant
QMAX_A = 127.0  # 8-bit symmetric act quant


def _quant_conv_kernel(x_ref, w_ref, s_ref, b_ref, o_ref):
    """One grid step: int-exact bf16-code matmul + fused dequant/bias epilogue.

    x_ref : VMEM (tm, Kp) bf16 -- im2col patch tile of activation codes
    w_ref : VMEM (Kp, Op) bf16 -- transposed conv-weight codes (constant across grid)
    s_ref : VMEM (1,  Op) f32  -- per-output-channel dequant scale = a_delta * w_delta
    b_ref : VMEM (1,  Op) f32  -- bias
    o_ref : VMEM (tm, Op) f32
    """
    acc = jnp.dot(x_ref[...], w_ref[...], preferred_element_type=jnp.float32)
    o_ref[...] = acc * s_ref[...] + b_ref[...]


def _pick_tm(kp, op, tm):
    """Clamp the row tile so double-buffered tiles fit comfortably in VMEM (gen-aware)."""
    try:
        vmem = pltpu.get_tpu_info().vmem_capacity_bytes
    except Exception:  # pragma: no cover - conservative fallback (v7x = 64 MiB)
        vmem = 64 << 20
    budget = vmem // 4  # leave headroom for the compiler / other allocations
    # 2x (double-buffer) X tile (bf16) + 2x out tile (f32) + 2x weight (bf16, default bufs)
    while tm > 8 and 2 * tm * (kp * 2 + op * 4) + 2 * kp * op * 2 > budget:
        tm //= 2
    return tm


def timestep_calibrated_quant_conv2d(x, weight, bias, act_deltas, timestep,
                                     timesteps_per_act_quantiser, *, tm=256):
    """Forward of TimeStepCalibratedQuantWrapper(Conv2d(C->O, 3x3, pad=1, stride=1))."""
    N, C, H, W = x.shape
    O, Cw, KH, KW = weight.shape
    assert Cw == C

    f32 = jnp.float32

    # ---- hoisted weight fake-quant -> integer codes + per-channel scale (tiny, fused by XLA)
    w = weight.astype(f32).reshape(O, -1)                               # [O, K]
    w_delta = jnp.max(jnp.abs(w), axis=1) / QMAX_W                      # [O]
    w_delta = jnp.maximum(w_delta, 1e-8)
    w_codes = jnp.clip(jnp.round(w / w_delta[:, None]), -QMAX_W, QMAX_W)

    # ---- select act quantiser for this timestep (static python int index) ------
    q_idx = timestep // timesteps_per_act_quantiser
    a_delta = act_deltas[q_idx].astype(f32)

    # ---- quantise activation ONCE on the NCHW tensor (before the 9x im2col expansion)
    x_codes = jnp.clip(jnp.round(x.astype(f32) / a_delta), -QMAX_A, QMAX_A)

    # codes are integers <= 127 -> exactly representable in bf16 (MXU-native everywhere)
    x_codes = x_codes.astype(jnp.bfloat16)
    w_codes = w_codes.astype(jnp.bfloat16)

    # ---- im2col of the CODE tensor (glue; pad=1, stride=1, dilation=1, groups=1).
    # Zero padding in code-space == zero padding of the fake-quantised activation.
    xp = jnp.pad(x_codes, ((0, 0), (0, 0), (1, 1), (1, 1)))
    patches = [xp[:, :, dh:dh + H, dw:dw + W] for dh in range(KH) for dw in range(KW)]
    p = jnp.stack(patches, axis=0).reshape(KH, KW, N, C, H, W)
    p = jnp.transpose(p, (2, 4, 5, 3, 0, 1))                            # [N,H,W,C,KH,KW]
    K = C * KH * KW
    M = N * H * W
    X = p.reshape(M, K)                                                 # bf16 [M, K]
    Wt = w_codes.T                                                      # bf16 [K, O]

    # ---- lane-dense padding: K, O -> multiples of 128; M -> multiple of tm ------
    Kp = pl.cdiv(K, 128) * 128
    Op = pl.cdiv(O, 128) * 128
    tm = _pick_tm(Kp, Op, tm)
    Mp = pl.cdiv(M, tm) * tm
    X = jnp.pad(X, ((0, Mp - M), (0, Kp - K)))
    Wt = jnp.pad(Wt, ((0, Kp - K), (0, Op - O)))
    scale = jnp.pad((a_delta * w_delta).reshape(1, O), ((0, 0), (0, Op - O))).astype(f32)
    b2 = jnp.pad(bias.astype(f32).reshape(1, O), ((0, 0), (0, Op - O)))

    out = pl.pallas_call(
        _quant_conv_kernel,
        out_shape=jax.ShapeDtypeStruct((Mp, Op), jnp.float32),
        grid_spec=pltpu.PrefetchScalarGridSpec(
            num_scalar_prefetch=0,
            grid=(Mp // tm,),
            in_specs=[
                pl.BlockSpec((tm, Kp), lambda i: (i, 0)),   # X code tile (bf16)
                pl.BlockSpec((Kp, Op), lambda i: (0, 0)),   # full weight codes (bf16)
                pl.BlockSpec((1, Op), lambda i: (0, 0)),    # dequant scale (f32)
                pl.BlockSpec((1, Op), lambda i: (0, 0)),    # bias (f32)
            ],
            out_specs=pl.BlockSpec((tm, Op), lambda i: (i, 0)),
        ),
        compiler_params=pltpu.CompilerParams(
            dimension_semantics=("parallel",)),
    )(X, Wt, scale, b2)

    out = out[:M, :O]                                                   # drop padding
    y = out.reshape(N, H, W, O).transpose(0, 3, 1, 2)                   # back to NCHW
    return y


def reference_forward(x, weight, bias, act_deltas, timestep, timesteps_per_act_quantiser):
    """Pure-JAX reference of the same forward (matches PyTorch semantics)."""
    O = weight.shape[0]
    w_delta = jnp.max(jnp.abs(weight.reshape(O, -1)), axis=1).reshape(O, 1, 1, 1) / QMAX_W
    w_delta = jnp.maximum(w_delta, 1e-8)
    w_q = jnp.clip(jnp.round(weight / w_delta), -QMAX_W, QMAX_W) * w_delta
    a_delta = act_deltas[timestep // timesteps_per_act_quantiser]
    x_q = jnp.clip(jnp.round(x / a_delta), -QMAX_A, QMAX_A) * a_delta
    y = jax.lax.conv_general_dilated(
        x_q, w_q, window_strides=(1, 1), padding=((1, 1), (1, 1)),
        dimension_numbers=("NCHW", "OIHW", "NCHW"))
    return y + bias.reshape(1, -1, 1, 1)


if __name__ == "__main__":
    # ---- module config (mirrors __init__) --------------------------------------
    timesteps, k = 20, 5
    timesteps_per_act_quantiser = math.ceil(timesteps / k)              # 4
    n_quantisers = math.ceil(timesteps / timesteps_per_act_quantiser)   # 5
    timestep_for_calibration = 7                                        # -> quantiser 1

    # ---- deterministic parameter init (org_module = Conv2d(4, 8, 3, padding=1)) -
    key = jax.random.PRNGKey(0)
    kx, kw, kb = jax.random.split(key, 3)
    N, C, H, W = 2, 4, 16, 16
    O, KH, KW = 8, 3, 3
    x = jax.random.normal(kx, (N, C, H, W), dtype=jnp.float32)
    weight = 0.1 * jax.random.normal(kw, (O, C, KH, KW), dtype=jnp.float32)
    bias = 0.1 * jax.random.normal(kb, (O,), dtype=jnp.float32)
    # pre-calibrated per-quantiser activation deltas (deterministic)
    act_deltas = jnp.linspace(0.015, 0.035, n_quantisers, dtype=jnp.float32)

    y = timestep_calibrated_quant_conv2d(
        x, weight, bias, act_deltas, timestep_for_calibration,
        timesteps_per_act_quantiser)
    y = jax.block_until_ready(y)

    y_ref = reference_forward(
        x, weight, bias, act_deltas, timestep_for_calibration,
        timesteps_per_act_quantiser)

    assert y.shape == (N, O, H, W), y.shape
    assert jnp.allclose(y, y_ref, rtol=1e-4, atol=1e-4), float(jnp.max(jnp.abs(y - y_ref)))
    print("KERNEL_OK")
</pallas_src>

<mosaic_0001>
module attributes {stable_mosaic.version = 11 : i64} {
  func.func @_quant_conv_kernel(%arg0: i32, %arg1: memref<256x128xbf16, #tpu.memory_space<vmem>>, %arg2: memref<128x128xbf16, #tpu.memory_space<vmem>>, %arg3: memref<1x128xf32, #tpu.memory_space<vmem>>, %arg4: memref<1x128xf32, #tpu.memory_space<vmem>>, %arg5: memref<256x128xf32, #tpu.memory_space<vmem>>) attributes {dimension_semantics = [#tpu.dimension_semantics<parallel>], iteration_bounds = array<i64: 2>, scalar_prefetch = 0 : i64, scratch_operands = 0 : i64, tpu.core_type = #tpu.core_type<tc>, window_params = [{transform_indices = @transform_0, window_bounds = array<i64: 256, 128>}, {pipeline_mode = #tpu.pipeline_mode<synchronous>, transform_indices = @transform_1, window_bounds = array<i64: 128, 128>}, {pipeline_mode = #tpu.pipeline_mode<synchronous>, transform_indices = @transform_2, window_bounds = array<i64: 1, 128>}, {pipeline_mode = #tpu.pipeline_mode<synchronous>, transform_indices = @transform_3, window_bounds = array<i64: 1, 128>}, {transform_indices = @transform_4, window_bounds = array<i64: 256, 128>}]} {
    %c0 = arith.constant 0 : index
    %c0_0 = arith.constant 0 : index
    %0 = vector.load %arg1[%c0, %c0_0] : memref<256x128xbf16, #tpu.memory_space<vmem>>, vector<256x128xbf16>
    %c0_1 = arith.constant 0 : index
    %c0_2 = arith.constant 0 : index
    %1 = vector.load %arg2[%c0_1, %c0_2] : memref<128x128xbf16, #tpu.memory_space<vmem>>, vector<128x128xbf16>
    %cst = arith.constant dense<0.000000e+00> : vector<256x128xf32>
    %2 = tpu.matmul %0, %1, %cst {dimension_numbers = #tpu.dot_dimension_numbers<[1], [0], [0], [1], [0, 0, 1, 1], [], []>} : vector<256x128xbf16>, vector<128x128xbf16>, vector<256x128xf32> -> vector<256x128xf32>
    %c0_3 = arith.constant 0 : index
    %c0_4 = arith.constant 0 : index
    %3 = vector.load %arg3[%c0_3, %c0_4] : memref<1x128xf32, #tpu.memory_space<vmem>>, vector<1x128xf32>
    %4 = vector.broadcast %3 : vector<1x128xf32> to vector<256x128xf32>
    %5 = arith.mulf %2, %4 : vector<256x128xf32>
    %c0_5 = arith.constant 0 : index
    %c0_6 = arith.constant 0 : index
    %6 = vector.load %arg4[%c0_5, %c0_6] : memref<1x128xf32, #tpu.memory_space<vmem>>, vector<1x128xf32>
    %7 = vector.broadcast %6 : vector<1x128xf32> to vector<256x128xf32>
    %8 = arith.addf %5, %7 : vector<256x128xf32>
    %c0_7 = arith.constant 0 : index
    %c0_8 = arith.constant 0 : index
    %9 = vector.load %arg5[%c0_7, %c0_8] : memref<256x128xf32, #tpu.memory_space<vmem>>, vector<256x128xf32>
    tpu.vector_store %arg5[%c0_7, %c0_8], %8 {strides = array<i32>} : memref<256x128xf32, #tpu.memory_space<vmem>>, vector<256x128xf32>,
    return
  }
  func.func @transform_0(%arg0: i32) -> (i32, i32) {
    %c0_i32 = arith.constant 0 : i32
    %c0_i32_0 = arith.constant 0 : i32
    return %arg0, %c0_i32 : i32, i32
  }
  func.func @transform_1(%arg0: i32) -> (i32, i32) {
    %c0_i32 = arith.constant 0 : i32
    %c0_i32_0 = arith.constant 0 : i32
    %c0_i32_1 = arith.constant 0 : i32
    return %c0_i32, %c0_i32_0 : i32, i32
  }
  func.func @transform_2(%arg0: i32) -> (i32, i32) {
    %c0_i32 = arith.constant 0 : i32
    %c0_i32_0 = arith.constant 0 : i32
    %c0_i32_1 = arith.constant 0 : i32
    return %c0_i32, %c0_i32_0 : i32, i32
  }
  func.func @transform_3(%arg0: i32) -> (i32, i32) {
    %c0_i32 = arith.constant 0 : i32
    %c0_i32_0 = arith.constant 0 : i32
    %c0_i32_1 = arith.constant 0 : i32
    return %c0_i32, %c0_i32_0 : i32, i32
  }
  func.func @transform_4(%arg0: i32) -> (i32, i32) {
    %c0_i32 = arith.constant 0 : i32
    %c0_i32_0 = arith.constant 0 : i32
    return %arg0, %c0_i32 : i32, i32
  }
}

</mosaic_0001>

<bundles_post_ra>
// kernel: tpu_custom_call.1
= control target key start
LH: loop header
LB: loop body
LE: loop exit
PB: predicated region body
PF: predicated region fallthrough
CT: control target
= control target key end

     0   :  { %9 = vsyncpa [#allocation3], 0  ;;  %s1508_s0 = inlined_call_operand.hbm [shape: bf16[512,128], index: 0, kind: input, shape index: {}]   ;;  %s1509_s1 = inlined_call_operand.hbm [shape: bf16[128,128], index: 1, kind: input, shape index: {}]   ;;  %s1510_s2 = inlined_call_operand.vmem [shape: f32[1,128], index: 2, kind: input, shape index: {}]   ;;  %s1511_s3 = inlined_call_operand.vmem [shape: f32[1,128], index: 3, kind: input, shape index: {}]   ;;  %s1512_s4 = inlined_call_operand.hbm [shape: f32[512,128], index: 4, kind: output, shape index: {}]  }
   0x1   :  { %11 = vsyncpa [#allocation3 + $0x1], 0 }
   0x2   :  { %12 = vsyncpa [#allocation6], 0 }
   0x3   :  { %13 = vsyncpa [#allocation4], 0 }
   0x4   :  { %15 = vsyncpa [#allocation4 + $0x1], 0  ;;  %s1173_s15 = smov 0   ;;  %s1175_s16 = smov 0  }
   0x5   :  { %s1177_s17 = smov 0   ;;  %s1179_s18 = smov 0  }
   0x6 LB: > { %s1194_s19 = sadd.s32 4294967295, %s1139_s18   ;;  %s794_s20 = sadd.s32 4294967294, %s1139_s18   ;;  %s1139_s18 = sphi %s1179_s18, %s1532_s18   ;;  %s1135_s17 = sphi %s1177_s17, %s1531_s17   ;;  %s1131_s16 = sphi %s1175_s16, %s1530_s16   ;;  %s1127_s15 = sphi %s1173_s15, %s1529_s15  }
   0x7   : > { %p41_p0 = scmp.ne.s32.totalorder %s1131_s16, %s1127_s15  ;;  %p1513_p1 = scmp.eq.s32.totalorder %s1194_s19, 0 }
   0x8   : > { %p134_p3 = scmp.eq.s32.totalorder %s794_s20, 1  ;;  %p795_p5 = scmp.ge.s32.totalorder %s1139_s18, 1 }
   0x9   : > { %p1203_p4 = por %p1513_p1, %p41_p0  ;;  %p141_p7 = scmp.lt.s32.totalorder %s1139_s18, 3 }
   0xa   : > { %p1208_p6 = por %p134_p3, %p41_p0  ;;  %s1141_s24 = smov [#allocation5]  }
   0xb   : > { %s1516_s21 = scalar_select %p1203_p4, 1, 0 }
   0xc   : > { %s1517_s22 = scalar_select %p1208_p6, 1, 0 }
   0xd   : > { %p1213_p8 = pnand %p795_p5, %p141_p7  ;;  %s153_s25 = sshll.u32 %s1141_s24, 4  ;;  %s1217_s25 = int_to_ptr.vmem [resolvable:$true] %s153_s25 }
   0xe   : > { %s1229_s27 = sadd.s32 1, %s1139_s18   ;;  %s28_s28 = sadd.s32 1, %s1135_s17 }
   0xf   : > { %s1518_s23 = scalar_select %p1213_p8, 1, 0 }
  0x10   : > { %p934_p9 = pneg %p1213_p8  ;;  %s25_s29 = ssub.s32 %s1139_s18, %s1229_s27 }
  0x11   : > { %s1011_s6 = scalar_lea.hbm %s1509_s1, 1024 }
  0x12   : > { %p1224_p11 = pnand %p934_p9, %p1513_p1  ;;  %p1012_p12 = scmp.ne.s32.totalorder %s1509_s1, %s1011_s6 }
  0x13   : > { %p1018_p5 = scmp.lt.u32.totalorder %s1011_s6, %s1509_s1 }
  0x14   : > { %p1013_p13 = pneg %p1224_p11 }
  0x16   : > { %p1014_p0 = pnand %p1013_p13, %p1012_p12 }
  0x18   : > { %p1015_p3 = pneg %p1014_p0 }
  0x1a   : > { %p1020_p7 = pnand %p1018_p5, %p1015_p3 }
  0x1c   : > { %1023 = shalt.err (!%p1020_p7)
}
  0x1d   : > { %s1024_s11 = scalar_lea.vmem %s1217_s25, 1024  ;;  %p1032_p2 = scmp.lt.s32.totalorder %s1217_s25, %s1217_s25 }
  0x1e   : > { %p1025_p9 = scmp.ne.s32.totalorder %s1217_s25, %s1024_s11  ;;  %p1033_p6 = scmp.lt.s32.totalorder %s1024_s11, %s1024_s11 }
  0x20   : > { %p1027_p10 = pnand %p1025_p9, %p1013_p13  ;;  %p1034_p4 = por %p1033_p6, %p1032_p2 }
  0x22   : > { %p1028_p1 = pneg %p1027_p10 }
  0x24   : > { %p1035_p8 = pnand %p1034_p4, %p1028_p1 }
  0x26   : > { %1038 = shalt.err (!%p1035_p8)
}
  0x27   : > { %s1142_s12 = smov 64   ;;  %s1143_s13 = smov 4  }
  0x28   : > { %937 = dma.hbm_to_vmem [thread:$0]  (!%p1224_p11), %s1509_s1, 1024, %s1217_s25, [#allocation6], %s1142_s12, %s1142_s12, %s1143_s13  }
  0x29   : > { %p26_p1 = scmp.eq.s32.totalorder %s25_s29, 0  ;;  %p35_p2 = scmp.ne.s32.totalorder %s1135_s17, %s1131_s16 }
  0x2a   : > { %p36_p4 = scmp.eq.s32.totalorder %s1139_s18, 0  ;;  %p947_p6 = scmp.lt.s32.totalorder %s1139_s18, 2 }
  0x2b   : > { %s1263_s24 = scalar_select %p26_p1, %s1135_s17, %s28_s28  }
  0x2c   : > { %p37_p8 = por %p36_p4, %p35_p2  ;;  %p1520_p10 = scmp.eq.s32.totalorder %s1194_s19, 1 }
  0x2d   : > { %s173_s26 = sand.u32 1, %s1135_s17   ;;  %s836_s5 = sshll.u32 %s1139_s18, 11 }
  0x2e   : > { %p1267_p12 = por %p1520_p10, %p35_p2  ;;  %s798_s6 = sshll.u32 %s173_s26, 7 }
  0x2f   : > { %s1276_s9 = scalar_lea.hbm %s1508_s0, %s836_s5  ;;  %s177_s25 = scalar_lea.vmem [#allocation2], %s798_s6 }
  0x30   : > { %s184_s28 = sshll.u32 %s177_s25, 4  ;;  %p1278_p11 = pnand %p947_p6, %p37_p8  ;;  %s1282_s28 = int_to_ptr.vmem [resolvable:$true] %s184_s28 }
  0x31   : > { %s1284_s10 = scalar_lea.sflag [#allocation3], %s173_s26  ;;  %s1039_s11 = scalar_lea.hbm %s1276_s9, 2048 }
  0x32   : > { %p1040_p13 = scmp.ne.s32.totalorder %s1276_s9, %s1039_s11  ;;  %p1041_p0 = pneg %p1278_p11 }
  0x33   : > { %s1044_s5 = scalar_lea.hbm %s1508_s0, 4096  ;;  %p1045_p7 = scmp.lt.u32.totalorder %s1276_s9, %s1508_s0 }
  0x34   : > { %p1042_p3 = pnand %p1041_p0, %p1040_p13  ;;  %p1046_p9 = scmp.lt.u32.totalorder %s1044_s5, %s1039_s11 }
  0x35   : > { %p1048_p2 = scmp.lt.u32.totalorder %s1039_s11, %s1276_s9 }
  0x36   : > { %p1043_p5 = pneg %p1042_p3  ;;  %p1047_p1 = por %p1046_p9, %p1045_p7 }
  0x38   : > { %p1049_p4 = por %p1048_p2, %p1047_p1 }
  0x3a   : > { %p1050_p6 = pnand %p1049_p4, %p1043_p5 }
  0x3c   : > { %1053 = shalt.err (!%p1050_p6)
}
  0x3d   : > { %s1054_s26 = scalar_lea.vmem %s1282_s28, 2048  ;;  %s1144_s8 = smov [#allocation2]  }
  0x3e   : > { %p1055_p8 = scmp.ne.s32.totalorder %s1282_s28, %s1054_s26  ;;  %s1059_s25 = sshll.u32 %s1144_s8, 4  ;;  %s1060_s25 = int_to_ptr.vmem [resolvable:$false] %s1059_s25 }
  0x3f   : > { %s1061_s14 = scalar_lea.vmem %s1060_s25, 4096  ;;  %p1062_p3 = scmp.lt.s32.totalorder %s1282_s28, %s1060_s25 }
  0x40   : > { %p1057_p10 = pnand %p1055_p8, %p1041_p0  ;;  %p1063_p7 = scmp.lt.s32.totalorder %s1061_s14, %s1054_s26 }
  0x42   : > { %p1058_p13 = pneg %p1057_p10  ;;  %p1064_p9 = por %p1063_p7, %p1062_p3 }
  0x44   : > { %p1065_p1 = pnand %p1064_p9, %p1058_p13 }
  0x46   : > { %1068 = shalt.err (!%p1065_p1)
}
  0x47   : > { %941 = dma.hbm_to_vmem [thread:$0]  (!%p1278_p11), %s1276_s9, 2048, %s1282_s28, %s1284_s10, %s1142_s12, %s1142_s12, %s1143_s13  }
  0x48   : > { %p1523_p0 = scmp.ne.s32.totalorder %s1518_s23, 0 }
  0x49   : > { %s1318_s11 = sand.u32 (!%p1523_p0), 1, %s1131_s16   ;;  %p1524_p5 = scmp.ne.s32.totalorder (!%p1523_p0), %s1516_s21, 0 }
  0x4a   : > { %196 = sbr.rel (%p1523_p0) target bundleno = 376 (0x178), region = 36  ;;  %s802_s20 = sshll.u32 (!%p1523_p0), %s1318_s11, 7 }
  0x4b   : > { %s199_s5 = scalar_lea.sflag (!%p1523_p0), [#allocation3], %s1318_s11  ;;  %s1322_s6 = scalar_lea.vmem (!%p1523_p0), [#allocation2], %s802_s20 }
  0x51   : > { %1114 = dma.done.wait (%p1524_p5), %s199_s5, 2048  }
  0x52   : > { %1116 = vsyncadd (%p1524_p5), %s199_s5, 4294965248  ;;  %p1525_p11 = scmp.eq.s32.totalorder %s1194_s19, 0 }
  0x54   : > { %1118 = dma.done.wait (%p1525_p11), [#allocation6], 1024   ;;  %p1526_p2 = pmov %p1525_p11 }
  0x55   : > { %v987_v0 = vld [vmem:[#allocation5] sm:$0xff]   ;;  %v988_v1 = vld [vmem:[#allocation5 + $0x8] sm:$0xff]   ;;  %v989_v2 = vld [vmem:[#allocation5 + $0x10] sm:$0xff]   ;;  %s804_s12 = sshll.u32 %s1318_s11, 8  ;;  %s837_s29 = sshll.u32 %s1194_s19, 12 }
  0x56   : > { %1120 = vsyncadd (%p1526_p2), [#allocation6], 4294966272  ;;  %862 = vmatprep.subr.bf16.mxu0 %v987_v0  ;;  %910 = vmatprep.subr.bf16.mxu1 %v987_v0  ;;  %v990_v3 = vld [vmem:[#allocation5 + $0x18] sm:$0xff]   ;;  %v995_v4 = vld [vmem:[%s1322_s6] sm:$0xff]   ;;  %s1371_s28 = scalar_lea.vmem [#allocation7], %s804_s12  ;;  %s1454_s26 = scalar_lea.hbm %s1512_s4, %s837_s29 }
  0x57   : > { %863 = vmatpush3.bf16.msra.mxu0 %v987_v0  ;;  %918 = vmatpush3.bf16.msra.mxu1 %v987_v0  ;;  %v996_v5 = vld [vmem:[%s1322_s6 + $0x40] sm:$0xff]   ;;  %v992_v7 = vld [vmem:[#allocation5 + $0x28] sm:$0xff]   ;;  %v993_v8 = vld [vmem:[#allocation5 + $0x30] sm:$0xff]   ;;  %s711_s10 = sshll.u32 %s1371_s28, 4  ;;  %s698_s8 = scalar_lea.sflag [#allocation4], %s1318_s11  ;;  %s1456_s10 = int_to_ptr.vmem [resolvable:$true] %s711_s10 }
  0x58   : > { %864 = vmatprep.subr.bf16.mxu0 %v988_v1  ;;  %911 = vmatprep.subr.bf16.mxu1 %v988_v1  ;;  %v991_v6 = vld [vmem:[#allocation5 + $0x20] sm:$0xff]   ;;  %v994_v9 = vld [vmem:[#allocation5 + $0x38] sm:$0xff]   ;;  %v997_v10 = vld [vmem:[%s1322_s6 + $0x8] sm:$0xff]   ;;  %s1069_s25 = scalar_lea.vmem %s1456_s10, 4096  ;;  %s1145_s14 = smov [#allocation7]  }
  0x59   : > { %878 = vmatprep.mubr.bf16.mxu0 %v995_v4  ;;  %894 = vmatprep.mubr.bf16.mxu1 %v996_v5  ;;  %v998_v11 = vld [vmem:[%s1322_s6 + $0x48] sm:$0xff]   ;;  %v999_v12 = vld [vmem:[%s1322_s6 + $0x10] sm:$0xff]   ;;  %v1001_v14 = vld [vmem:[%s1322_s6 + $0x18] sm:$0xff]   ;;  %p1070_p4 = scmp.ne.s32.totalorder %s1456_s10, %s1069_s25  ;;  %s1073_s20 = sshll.u32 %s1145_s14, 4  ;;  %s1074_s20 = int_to_ptr.vmem [resolvable:$false] %s1073_s20 }
  0x5a   : > { %v1000_v13 = vld [vmem:[%s1322_s6 + $0x50] sm:$0xff]   ;;  %v1002_v15 = vld [vmem:[%s1322_s6 + $0x58] sm:$0xff]   ;;  %v1003_v16 = vld [vmem:[%s1322_s6 + $0x20] sm:$0xff]   ;;  %s1075_s5 = scalar_lea.vmem %s1074_s20, 8192  ;;  %p1076_p10 = scmp.lt.s32.totalorder %s1456_s10, %s1074_s20 }
  0x5b   : > { %865 = vmatpush3.bf16.msra.mxu0 %v988_v1  ;;  %919 = vmatpush3.bf16.msra.mxu1 %v988_v1  ;;  %v1004_v17 = vld [vmem:[%s1322_s6 + $0x60] sm:$0xff]   ;;  %v1005_v18 = vld [vmem:[%s1322_s6 + $0x28] sm:$0xff]   ;;  %v1007_v20 = vld [vmem:[%s1322_s6 + $0x30] sm:$0xff]   ;;  %p1071_p6 = pnand %p1070_p4, %p1267_p12  ;;  %p1077_p13 = scmp.lt.s32.totalorder %s1075_s5, %s1069_s25 }
  0x5c   : > { %866 = vmatprep.subr.bf16.mxu0 %v989_v2  ;;  %912 = vmatprep.subr.bf16.mxu1 %v989_v2  ;;  %v1006_v19 = vld [vmem:[%s1322_s6 + $0x68] sm:$0xff]   ;;  %v1008_v21 = vld [vmem:[%s1322_s6 + $0x70] sm:$0xff]   ;;  %v1009_v22 = vld [vmem:[%s1322_s6 + $0x38] sm:$0xff]  }
  0x5d   : > { %v1010_v23 = vld [vmem:[%s1322_s6 + $0x78] sm:$0xff]   ;;  %v1351_v24 = vld [vmem:[%s1510_s2] ss:$0 sm:$0xff]  ;;  %p1072_p8 = pneg %p1071_p6  ;;  %p1078_p3 = por %p1077_p13, %p1076_p10 }
  0x5e   : > { %v1357_v26 = vld [vmem:[%s1511_s3] ss:$0 sm:$0xff] }
  0x5f   : > { %867 = vmatpush3.bf16.msra.mxu0 %v989_v2  ;;  %920 = vmatpush3.bf16.msra.mxu1 %v989_v2  ;;  %p1079_p7 = pnand %p1078_p3, %p1072_p8 }
  0x60   : > { %868 = vmatprep.subr.bf16.mxu0 %v990_v3  ;;  %913 = vmatprep.subr.bf16.mxu1 %v990_v3 }
  0x63   : > { %869 = vmatpush3.bf16.msra.mxu0 %v990_v3  ;;  %921 = vmatpush3.bf16.msra.mxu1 %v990_v3 }
  0x64   : > { %870 = vmatprep.subr.bf16.mxu0 %v991_v6  ;;  %914 = vmatprep.subr.bf16.mxu1 %v991_v6 }
  0x67   : > { %871 = vmatpush3.bf16.msra.mxu0 %v991_v6  ;;  %922 = vmatpush3.bf16.msra.mxu1 %v991_v6 }
  0x68   : > { %872 = vmatprep.subr.bf16.mxu0 %v992_v7  ;;  %915 = vmatprep.subr.bf16.mxu1 %v992_v7 }
  0x6b   : > { %873 = vmatpush3.bf16.msra.mxu0 %v992_v7  ;;  %923 = vmatpush3.bf16.msra.mxu1 %v992_v7 }
  0x6c   : > { %874 = vmatprep.subr.bf16.mxu0 %v993_v8  ;;  %916 = vmatprep.subr.bf16.mxu1 %v993_v8 }
  0x6f   : > { %875 = vmatpush3.bf16.msra.mxu0 %v993_v8  ;;  %924 = vmatpush3.bf16.msra.mxu1 %v993_v8 }
  0x70   : > { %876 = vmatprep.subr.bf16.mxu0 %v994_v9  ;;  %917 = vmatprep.subr.bf16.mxu1 %v994_v9 }
  0x73   : > { %877 = vmatpush3.bf16.msra.mxu0 %v994_v9  ;;  %925 = vmatpush3.bf16.msra.mxu1 %v994_v9 }
  0x76   : > { %879 = vmatmul.mubr.bf16.vlgmr.msra.gmra.mrb[0].mxu0 %v997_v10  ;;  %895 = vmatmul.mubr.bf16.vlgmr.msra.gmra.mrb[0].mxu1 %v998_v11 }
  0x77   : > { %882 = vmatprep.mubr.bf16.mxu0 %v999_v12  ;;  %898 = vmatprep.mubr.bf16.mxu1 %v1000_v13 }
  0x7e   : > { %883 = vmatmul.mubr.bf16.gmra.mrb[4].mxu0 %v1001_v14  ;;  %899 = vmatmul.mubr.bf16.gmra.mrb[4].mxu1 %v1002_v15 }
  0x7f   : > { %886 = vmatprep.mubr.bf16.mxu0 %v1003_v16  ;;  %902 = vmatprep.mubr.bf16.mxu1 %v1004_v17 }
  0x86   : > { %887 = vmatmul.mubr.bf16.gmra.mrb[8].mxu0 %v1005_v18  ;;  %903 = vmatmul.mubr.bf16.gmra.mrb[8].mxu1 %v1006_v19 }
  0x87   : > { %890 = vmatprep.mubr.bf16.mxu0 %v1007_v20  ;;  %906 = vmatprep.mubr.bf16.mxu1 %v1008_v21 }
  0x8e   : > { %891 = vmatmul.mubr.bf16.gmra.mrb[12].mxu0 %v1009_v22  ;;  %907 = vmatmul.mubr.bf16.gmra.mrb[12].mxu1 %v1010_v23 }
 0x149   : > { %v880_v25 = vpop.f32.mrb[0].mxu0  ;;  %v896_v27 = vpop.f32.mrb[0].mxu1 }
 0x14a   : > { %v596_v28 = vmul.f32 %v880_v25, %v1351_v24  ;;  %v612_v29 = vmul.f32 %v896_v27, %v1351_v24  ;;  %v460_v30 = vpop.f32.mrb[1].mxu0  ;;  %v524_v31 = vpop.f32.mrb[1].mxu1 }
 0x14b   : > { %v594_v32 = vmul.f32 %v1351_v24, %v460_v30  ;;  %v610_v33 = vmul.f32 %v1351_v24, %v524_v31  ;;  %v881_v34 = vpop.f32.mrb[2].mxu0  ;;  %v897_v35 = vpop.f32.mrb[2].mxu1 }
 0x14c   : > { %v635_v36 = vadd.f32 %v1357_v26, %v596_v28  ;;  %v651_v37 = vadd.f32 %v1357_v26, %v612_v29  ;;  %v597_v38 = vmul.f32 %v881_v34, %v1351_v24  ;;  %v613_v39 = vmul.f32 %v897_v35, %v1351_v24  ;;  %v463_v40 = vpop.f32.mrb[3].mxu0  ;;  %v527_v41 = vpop.f32.mrb[3].mxu1 }
 0x14d   : > { %v633_v42 = vadd.f32 %v1357_v26, %v594_v32  ;;  %v649_v43 = vadd.f32 %v1357_v26, %v610_v33  ;;  %v595_v44 = vmul.f32 %v1351_v24, %v463_v40  ;;  %v611_v45 = vmul.f32 %v1351_v24, %v527_v41 }
 0x14e   : > { %667 = vst [vmem:[%s1371_s28 + $0x10] sm:$0xff] %v635_v36  ;;  %683 = vst [vmem:[%s1371_s28 + $0x90] sm:$0xff] %v651_v37  ;;  %v636_v46 = vadd.f32 %v1357_v26, %v597_v38  ;;  %v652_v47 = vadd.f32 %v1357_v26, %v613_v39 }
 0x14f   : > { %665 = vst [vmem:[%s1371_s28] sm:$0xff] %v633_v42  ;;  %681 = vst [vmem:[%s1371_s28 + $0x80] sm:$0xff] %v649_v43  ;;  %v634_v48 = vadd.f32 %v1357_v26, %v595_v44  ;;  %v650_v49 = vadd.f32 %v1357_v26, %v611_v45 }
 0x150   : > { %668 = vst [vmem:[%s1371_s28 + $0x18] sm:$0xff] %v636_v46  ;;  %684 = vst [vmem:[%s1371_s28 + $0x98] sm:$0xff] %v652_v47 }
 0x151   : > { %666 = vst [vmem:[%s1371_s28 + $0x8] sm:$0xff] %v634_v48  ;;  %682 = vst [vmem:[%s1371_s28 + $0x88] sm:$0xff] %v650_v49  ;;  %v884_v50 = vpop.f32.mrb[4].mxu0  ;;  %v900_v51 = vpop.f32.mrb[4].mxu1 }
 0x152   : > { %v600_v52 = vmul.f32 %v884_v50, %v1351_v24  ;;  %v616_v53 = vmul.f32 %v900_v51, %v1351_v24  ;;  %v476_v54 = vpop.f32.mrb[5].mxu0  ;;  %v540_v55 = vpop.f32.mrb[5].mxu1 }
 0x153   : > { %v598_v56 = vmul.f32 %v1351_v24, %v476_v54  ;;  %v614_v57 = vmul.f32 %v1351_v24, %v540_v55  ;;  %v885_v58 = vpop.f32.mrb[6].mxu0  ;;  %v901_v59 = vpop.f32.mrb[6].mxu1 }
 0x154   : > { %v639_v60 = vadd.f32 %v1357_v26, %v600_v52  ;;  %v655_v61 = vadd.f32 %v1357_v26, %v616_v53  ;;  %v601_v62 = vmul.f32 %v885_v58, %v1351_v24  ;;  %v617_v63 = vmul.f32 %v901_v59, %v1351_v24  ;;  %v479_v0 = vpop.f32.mrb[7].mxu0  ;;  %v543_v1 = vpop.f32.mrb[7].mxu1 }
 0x155   : > { %v637_v2 = vadd.f32 %v1357_v26, %v598_v56  ;;  %v653_v3 = vadd.f32 %v1357_v26, %v614_v57  ;;  %v599_v4 = vmul.f32 %v1351_v24, %v479_v0  ;;  %v615_v5 = vmul.f32 %v1351_v24, %v543_v1 }
 0x156   : > { %671 = vst [vmem:[%s1371_s28 + $0x30] sm:$0xff] %v639_v60  ;;  %687 = vst [vmem:[%s1371_s28 + $0xb0] sm:$0xff] %v655_v61  ;;  %v640_v6 = vadd.f32 %v1357_v26, %v601_v62  ;;  %v656_v7 = vadd.f32 %v1357_v26, %v617_v63 }
 0x157   : > { %669 = vst [vmem:[%s1371_s28 + $0x20] sm:$0xff] %v637_v2  ;;  %685 = vst [vmem:[%s1371_s28 + $0xa0] sm:$0xff] %v653_v3  ;;  %v638_v8 = vadd.f32 %v1357_v26, %v599_v4  ;;  %v654_v9 = vadd.f32 %v1357_v26, %v615_v5 }
 0x158   : > { %672 = vst [vmem:[%s1371_s28 + $0x38] sm:$0xff] %v640_v6  ;;  %688 = vst [vmem:[%s1371_s28 + $0xb8] sm:$0xff] %v656_v7 }
 0x159   : > { %670 = vst [vmem:[%s1371_s28 + $0x28] sm:$0xff] %v638_v8  ;;  %686 = vst [vmem:[%s1371_s28 + $0xa8] sm:$0xff] %v654_v9  ;;  %v888_v10 = vpop.f32.mrb[8].mxu0  ;;  %v904_v11 = vpop.f32.mrb[8].mxu1 }
 0x15a   : > { %v604_v12 = vmul.f32 %v888_v10, %v1351_v24  ;;  %v620_v13 = vmul.f32 %v904_v11, %v1351_v24  ;;  %v492_v14 = vpop.f32.mrb[9].mxu0  ;;  %v556_v15 = vpop.f32.mrb[9].mxu1 }
 0x15b   : > { %v602_v16 = vmul.f32 %v1351_v24, %v492_v14  ;;  %v618_v17 = vmul.f32 %v1351_v24, %v556_v15  ;;  %v889_v18 = vpop.f32.mrb[10].mxu0  ;;  %v905_v19 = vpop.f32.mrb[10].mxu1 }
 0x15c   : > { %v643_v20 = vadd.f32 %v1357_v26, %v604_v12  ;;  %v659_v21 = vadd.f32 %v1357_v26, %v620_v13  ;;  %v605_v22 = vmul.f32 %v889_v18, %v1351_v24  ;;  %v621_v23 = vmul.f32 %v905_v19, %v1351_v24  ;;  %v495_v25 = vpop.f32.mrb[11].mxu0  ;;  %v559_v27 = vpop.f32.mrb[11].mxu1 }
 0x15d   : > { %v641_v28 = vadd.f32 %v1357_v26, %v602_v16  ;;  %v657_v29 = vadd.f32 %v1357_v26, %v618_v17  ;;  %v603_v30 = vmul.f32 %v1351_v24, %v495_v25  ;;  %v619_v31 = vmul.f32 %v1351_v24, %v559_v27 }
 0x15e   : > { %675 = vst [vmem:[%s1371_s28 + $0x50] sm:$0xff] %v643_v20  ;;  %691 = vst [vmem:[%s1371_s28 + $0xd0] sm:$0xff] %v659_v21  ;;  %v644_v32 = vadd.f32 %v1357_v26, %v605_v22  ;;  %v660_v33 = vadd.f32 %v1357_v26, %v621_v23 }
 0x15f   : > { %673 = vst [vmem:[%s1371_s28 + $0x40] sm:$0xff] %v641_v28  ;;  %689 = vst [vmem:[%s1371_s28 + $0xc0] sm:$0xff] %v657_v29  ;;  %v642_v34 = vadd.f32 %v1357_v26, %v603_v30  ;;  %v658_v35 = vadd.f32 %v1357_v26, %v619_v31 }
 0x160   : > { %676 = vst [vmem:[%s1371_s28 + $0x58] sm:$0xff] %v644_v32  ;;  %692 = vst [vmem:[%s1371_s28 + $0xd8] sm:$0xff] %v660_v33 }
 0x161   : > { %674 = vst [vmem:[%s1371_s28 + $0x48] sm:$0xff] %v642_v34  ;;  %690 = vst [vmem:[%s1371_s28 + $0xc8] sm:$0xff] %v658_v35  ;;  %v892_v36 = vpop.f32.mrb[12].mxu0  ;;  %v908_v37 = vpop.f32.mrb[12].mxu1 }
 0x162   : > { %v608_v38 = vmul.f32 %v892_v36, %v1351_v24  ;;  %v624_v39 = vmul.f32 %v908_v37, %v1351_v24  ;;  %v508_v40 = vpop.f32.mrb[13].mxu0  ;;  %v572_v41 = vpop.f32.mrb[13].mxu1 }
 0x163   : > { %v606_v42 = vmul.f32 %v1351_v24, %v508_v40  ;;  %v622_v43 = vmul.f32 %v1351_v24, %v572_v41  ;;  %v893_v44 = vpop.f32.mrb[14].mxu0  ;;  %v909_v45 = vpop.f32.mrb[14].mxu1 }
 0x164   : > { %v647_v46 = vadd.f32 %v1357_v26, %v608_v38  ;;  %v663_v47 = vadd.f32 %v1357_v26, %v624_v39  ;;  %v609_v48 = vmul.f32 %v893_v44, %v1351_v24  ;;  %v625_v49 = vmul.f32 %v909_v45, %v1351_v24  ;;  %v511_v50 = vpop.f32.mrb[15].mxu0  ;;  %v575_v51 = vpop.f32.mrb[15].mxu1 }
 0x165   : > { %v645_v52 = vadd.f32 %v1357_v26, %v606_v42  ;;  %v661_v53 = vadd.f32 %v1357_v26, %v622_v43  ;;  %v607_v54 = vmul.f32 %v1351_v24, %v511_v50  ;;  %v623_v55 = vmul.f32 %v1351_v24, %v575_v51 }
 0x166   : > { %679 = vst [vmem:[%s1371_s28 + $0x70] sm:$0xff] %v647_v46  ;;  %695 = vst [vmem:[%s1371_s28 + $0xf0] sm:$0xff] %v663_v47  ;;  %v648_v56 = vadd.f32 %v1357_v26, %v609_v48  ;;  %v664_v57 = vadd.f32 %v1357_v26, %v625_v49 }
 0x167   : > { %677 = vst [vmem:[%s1371_s28 + $0x60] sm:$0xff] %v645_v52  ;;  %693 = vst [vmem:[%s1371_s28 + $0xe0] sm:$0xff] %v661_v53  ;;  %v646_v24 = vadd.f32 %v1357_v26, %v607_v54  ;;  %v662_v58 = vadd.f32 %v1357_v26, %v623_v55 }
 0x168   : > { %680 = vst [vmem:[%s1371_s28 + $0x78] sm:$0xff] %v648_v56  ;;  %696 = vst [vmem:[%s1371_s28 + $0xf8] sm:$0xff] %v664_v57 }
 0x169   : > { %678 = vst [vmem:[%s1371_s28 + $0x68] sm:$0xff] %v646_v24  ;;  %694 = vst [vmem:[%s1371_s28 + $0xe8] sm:$0xff] %v662_v58 }
 0x16a   : > { %1082 = shalt.err (!%p1079_p7)
}
 0x16b   : > { %s1083_s6 = scalar_lea.hbm %s1454_s26, 4096  ;;  %s1087_s12 = scalar_lea.hbm %s1512_s4, 8192 }
 0x16c   : > { %p1084_p9 = scmp.ne.s32.totalorder %s1454_s26, %s1083_s6  ;;  %p1088_p5 = scmp.lt.u32.totalorder %s1454_s26, %s1512_s4 }
 0x16d   : > { %p1089_p11 = scmp.lt.u32.totalorder %s1087_s12, %s1083_s6  ;;  %p1091_p4 = scmp.lt.u32.totalorder %s1083_s6, %s1454_s26 }
 0x16e   : > { %p1085_p1 = pnand %p1084_p9, %p1267_p12 }
 0x16f   : > { %p1090_p2 = por %p1089_p11, %p1088_p5 }
 0x170   : > { %p1086_p0 = pneg %p1085_p1 }
 0x171   : > { %p1092_p6 = por %p1091_p4, %p1090_p2 }
 0x173   : > { %p1093_p8 = pnand %p1092_p6, %p1086_p0 }
 0x175   : > { %1096 = shalt.err (!%p1093_p8)
}
 0x176   : > { %s1146_s28 = smov 128   ;;  %s1147_s29 = smov 8  }
 0x177   : > { %932 = dma.vmem_to_hbm [thread:$0]  (%p1267_p12), %s1456_s10, 4096, %s1454_s26, %s698_s8, %s1146_s28, %s1146_s28, %s1147_s29  }
 0x178 PF: > { %s726_s19 = sand.u32 1, %s1127_s15   ;;  %p1527_p10 = scmp.ne.s32.totalorder %s1517_s22, 0 }
 0x179   : > { %p1528_p13 = scmp.ge.s32.totalorder %s1139_s18, 2  ;;  %s727_s7 = scalar_lea.sflag [#allocation4], %s726_s19 }
 0x17b   : > { %p943_p3 = pnand %p1528_p13, %p1527_p10 }
 0x17d   : > { %1122 = dma.done.wait (!%p943_p3), %s727_s7, 4096  }
 0x17e   : > { %1124 = vsyncadd (!%p943_p3), %s727_s7, 4294963200  ;;  %p18_p7 = scmp.ge.s32.totalorder %s1229_s27, 4   ;;  %s1529_s15 = smov %s1131_s16 }
 0x17f   : > { %s1530_s16 = smov %s1135_s17  ;;  %s1531_s17 = smov %s1263_s24 }
 0x180   : > { %s1532_s18 = smov %s1229_s27  ;;  %20 = sbr.rel (!%p18_p7) target bundleno = 6 (0x6), region = 85 }
 0x187   :  { %732 = vsyncpa [#allocation3], 1 }
 0x188   :  { %734 = vsyncpa [#allocation3 + $0x1], 1 }
 0x189   :  { %735 = vsyncpa [#allocation6], 1 }
 0x18a   :  { %736 = vsyncpa [#allocation4], 1 }
 0x18b   :  { %738 = vsyncpa [#allocation4 + $0x1], 1 }

</bundles_post_ra>
